<compile_context>
chip_gen: v7x
topology: tpu7x:2x2x1
jax: 0.10.0
libtpu: 0.0.40
codegen_flags: <defaults>
</compile_context>

<pallas_src>
import math

import jax
import jax.numpy as jnp
import numpy as np
from jax import lax
from jax.experimental import pallas as pl
from jax.experimental.pallas import tpu as pltpu


# ----------------------------------------------------------------------------
# Pallas kernels
# ----------------------------------------------------------------------------
def _bias_vec(bias_ref):
    # bias_ref: (3,) f32 in SMEM -> (3, 1) f32 vector for broadcast over lanes.
    row = lax.broadcasted_iota(jnp.int32, (3, 1), 0)
    return jnp.where(row == 0, bias_ref[0],
                     jnp.where(row == 1, bias_ref[1], bias_ref[2]))


def _torgb_kernel(bias_ref, mw_ref, x_ref, out_ref):
    # bias_ref: (3,) f32 SMEM  | mw_ref: (Bb, 3, C) | x_ref: (Bb, C, THW)
    acc = jnp.einsum("boc,bcs->bos", mw_ref[...], x_ref[...],
                     preferred_element_type=jnp.float32)
    out_ref[...] = (acc + _bias_vec(bias_ref)[None]).astype(out_ref.dtype)


def _torgb_skip_kernel(bias_ref, mw_ref, x_ref, skip_ref, out_ref):
    # Same as above plus fused skip add (skip_ref: (Bb, 3, THW)).
    acc = jnp.einsum("boc,bcs->bos", mw_ref[...], x_ref[...],
                     preferred_element_type=jnp.float32)
    acc = acc + skip_ref[...].astype(jnp.float32)
    out_ref[...] = (acc + _bias_vec(bias_ref)[None]).astype(out_ref.dtype)


# ----------------------------------------------------------------------------
# Hoisted modulation (O(B*S*C), done once in plain JAX)
# ----------------------------------------------------------------------------
def _modulated_weight(style, conv_w, mod_w, mod_b):
    """EqualLinear + weight modulation (demodulate=False) -> (B, 3, C)."""
    B, S = style.shape
    C = mod_w.shape[0]
    mod_scale = 1.0 / math.sqrt(S)          # EqualLinear scale (lr_mul = 1)
    conv_scale = 1.0 / math.sqrt(C)         # fan_in = C * 1 * 1
    s = style @ (mod_w * mod_scale).T + mod_b          # (B, C)
    return conv_scale * conv_w.reshape(3, C)[None, :, :] * s[:, None, :]


# ----------------------------------------------------------------------------
# Generation-aware tiling
# ----------------------------------------------------------------------------
def _round_up(a, m):
    return -(-a // m) * m


def _chip_budgets():
    """(double-buffered tile budget, soft vmem limit, hard vmem cap)."""
    kind = ""
    try:
        kind = jax.devices()[0].device_kind.lower()
    except Exception:
        pass
    if "v7" in kind:
        # v7x: only 64 MiB VMEM per TensorCore (32 MiB default scoped).
        return 24 << 20, 30 << 20, 52 << 20
    if "v5 lite" in kind or "v5lite" in kind or "v5e" in kind:
        # v5e: tightest default scoped VMEM (16 MiB).
        return 13 << 20, 15 << 20, 96 << 20
    # v6e (and v4/v5p/unknown): 128 MiB physical, 32 MiB default scoped.
    return 24 << 20, 30 << 20, 96 << 20


def _choose_tiles(B, C, HW, itemsize, with_skip, tile_budget):
    """Pick (Bb, THW, n_b, n_hw) for grid=(n_b, n_hw) with masked tails."""
    cols = C + 3 + (3 if with_skip else 0)     # x + out (+ skip) per lane-column
    hw_pad = _round_up(HW, 128)

    if HW <= 512:
        thw = HW                                # full row: always a legal block
    else:
        cap = max(128, tile_budget // (2 * cols * itemsize))
        thw = min((cap // 128) * 128, hw_pad)
        thw = max(thw, 512)                     # >=2 KiB DMA segments
        if thw >= HW:
            thw = HW
    n_hw = pl.cdiv(HW, thw)

    # Widen along batch so each step moves >= ~1 MiB (amortize ~0.35 us/step),
    # while staying inside the double-buffered VMEM tile budget.
    per_batch = cols * thw * itemsize
    bb = 1
    if per_batch < (1 << 20):
        bb = min(B, max(1, pl.cdiv(1 << 20, per_batch)))
        while bb > 1 and 2 * bb * per_batch > tile_budget:
            bb -= 1
    n_b = pl.cdiv(B, bb)

    # v7x has 2 TensorCores per chip: guarantee >= 2 programs.
    if n_b * n_hw < 2:
        if B >= 2:
            bb = pl.cdiv(B, 2)
            n_b = pl.cdiv(B, bb)
        if n_b * n_hw < 2 and hw_pad >= 256:
            thw = _round_up(pl.cdiv(hw_pad, 2), 128)
            n_hw = pl.cdiv(HW, thw)
    return bb, thw, n_b, n_hw


# ----------------------------------------------------------------------------
# Fused 1x1 modulated conv + bias (+ skip add)
# ----------------------------------------------------------------------------
def torgb_conv_pallas(x, style, conv_w, mod_w, mod_b, bias, skip_up=None):
    B, C, H, W = x.shape
    HW = H * W
    dt = x.dtype
    isz = jnp.dtype(dt).itemsize

    mw = _modulated_weight(style, conv_w, mod_w, mod_b).astype(dt)   # (B, 3, C)
    x2 = x.reshape(B, C, HW)
    bias1 = bias.reshape(3).astype(jnp.float32)

    with_skip = skip_up is not None
    tile_budget, vmem_soft, vmem_hard = _chip_budgets()
    bb, thw, n_b, n_hw = _choose_tiles(B, C, HW, isz, with_skip, tile_budget)

    in_specs = [
        pl.BlockSpec(memory_space=pltpu.MemorySpace.SMEM),        # bias (3,)
        pl.BlockSpec((bb, 3, C), lambda b, h: (b, 0, 0)),         # mw
        pl.BlockSpec((bb, C, thw), lambda b, h: (b, 0, h)),       # x tile
    ]
    args = [bias1, mw, x2]
    if with_skip:
        skip2 = skip_up.reshape(B, 3, HW).astype(dt)
        in_specs.append(pl.BlockSpec((bb, 3, thw), lambda b, h: (b, 0, h)))
        args.append(skip2)
        kernel = _torgb_skip_kernel
    else:
        kernel = _torgb_kernel

    cols = C + 3 + (3 if with_skip else 0)
    working = 2 * bb * cols * thw * isz + 2 * bb * 3 * C * isz + (1 << 20)
    vmem_limit = int(min(vmem_hard, max(vmem_soft, working + (2 << 20))))

    bytes_accessed = int(B * cols * HW * isz + B * 3 * C * isz + 12)
    cost = pl.CostEstimate(flops=int(2 * B * 3 * C * HW),
                           transcendentals=0,
                           bytes_accessed=bytes_accessed)

    out = pl.pallas_call(
        kernel,
        out_shape=jax.ShapeDtypeStruct((B, 3, HW), dt),
        grid=(n_b, n_hw),
        in_specs=in_specs,
        out_specs=pl.BlockSpec((bb, 3, thw), lambda b, h: (b, 0, h)),
        compiler_params=pltpu.CompilerParams(
            dimension_semantics=("parallel", "parallel"),
            vmem_limit_bytes=vmem_limit),
        cost_estimate=cost,
    )(*args)

    return out.reshape(B, 3, H, W)


# ----------------------------------------------------------------------------
# Skip-path glue: Upsample (upfirdn2d up=2, kernel [1,3,3,1]) -- separable,
# implemented as shift/interleave (no grouped conv).
# ----------------------------------------------------------------------------
def upsample_2x(x, blur_kernel=(1, 3, 3, 1), factor=2):
    """upfirdn2d(x, make_kernel(k)*factor**2, up=2, pad=(2,1)) for the default."""
    k1 = np.asarray(blur_kernel, np.float64)
    # TODO(synk): general (non length-4 / factor-2) blur kernels would need a
    # generic upfirdn path; ToRGB only uses the default [1,3,3,1], factor 2.
    assert k1.ndim == 1 and k1.shape[0] == 4 and factor == 2
    a = (k1 / k1.sum()) * factor             # per-axis 1-D kernel incl. gain
    kf = [float(v) for v in a[::-1]]         # upfirdn convolves -> flip
    # With pad0=2, pad1=1 (derived from kh=4, f=2):
    #   y[2i]   = kf[0]*x[i-1] + kf[2]*x[i]
    #   y[2i+1] = kf[1]*x[i]   + kf[3]*x[i+1]
    def up_axis(v, axis):
        n = v.shape[axis]
        zero = jnp.zeros_like(lax.slice_in_dim(v, 0, 1, axis=axis))
        x_prev = jnp.concatenate(
            [zero, lax.slice_in_dim(v, 0, n - 1, axis=axis)], axis=axis)
        x_next = jnp.concatenate(
            [lax.slice_in_dim(v, 1, n, axis=axis), zero], axis=axis)
        even = kf[0] * x_prev + kf[2] * v
        odd = kf[1] * v + kf[3] * x_next
        out = jnp.stack([even, odd], axis=axis + 1)
        return out.reshape(v.shape[:axis] + (2 * n,) + v.shape[axis + 1:])

    x = up_axis(x, 2)   # height
    x = up_axis(x, 3)   # width
    return x


# ----------------------------------------------------------------------------
# ToRGB forward
# ----------------------------------------------------------------------------
def to_rgb_forward(x, style, params, skip=None):
    skip_up = upsample_2x(skip) if skip is not None else None
    # TODO(synk): F.interpolate bilinear fallback for mismatched skip shapes is
    # not implemented (StyleGAN2 keeps shapes matched after the 2x upsample).
    return torgb_conv_pallas(x, style, params["conv_w"], params["mod_w"],
                             params["mod_b"], params["bias"], skip_up=skip_up)


# ----------------------------------------------------------------------------
# Independent references (pure JAX / numpy) for validation
# ----------------------------------------------------------------------------
def _upfirdn2d_np(x, k2, up, pad0, pad1):
    """Brute-force numpy upfirdn2d (zero-insert, pad, convolve with k2)."""
    x = np.asarray(x, np.float64)
    B, C, H, W = x.shape
    kh, kw = k2.shape
    u = np.zeros((B, C, H * up, W * up), np.float64)
    u[:, :, ::up, ::up] = x
    u = np.pad(u, ((0, 0), (0, 0), (pad0, pad1), (pad0, pad1)))
    oh = H * up + pad0 + pad1 - kh + 1
    ow = W * up + pad0 + pad1 - kw + 1
    kf = k2[::-1, ::-1]
    out = np.zeros((B, C, oh, ow), np.float64)
    for i in range(kh):
        for j in range(kw):
            out += kf[i, j] * u[:, :, i:i + oh, j:j + ow]
    return out


def _upsample_ref_np(x_np, blur_kernel=(1, 3, 3, 1), factor=2):
    k = np.asarray(blur_kernel, np.float64)
    k2 = np.outer(k, k)
    k2 = k2 / k2.sum() * (factor ** 2)
    p = k2.shape[0] - factor
    pad0 = (p + 1) // 2 + factor - 1
    pad1 = p // 2
    return _upfirdn2d_np(x_np, k2, factor, pad0, pad1)


def to_rgb_reference(x, style, params, skip=None):
    B, C, H, W = x.shape
    S = style.shape[1]
    s = style @ (params["mod_w"] * (1.0 / math.sqrt(S))).T + params["mod_b"]
    w = (1.0 / math.sqrt(C)) * params["conv_w"].reshape(3, C)[None] * s[:, None, :]
    out = jnp.einsum("boc,bchw->bohw", w.astype(jnp.float32),
                     x.astype(jnp.float32)) + params["bias"]
    if skip is not None:
        out = out + jnp.asarray(_upsample_ref_np(np.asarray(skip)),
                                dtype=jnp.float32)
    return out


def make_params(key, in_channel, style_dim):
    k_convw, k_modw, k_bias = jax.random.split(key, 3)
    return {
        # ModulatedConv2d.weight : randn(1, 3, C, 1, 1)
        "conv_w": jax.random.normal(k_convw, (1, 3, in_channel, 1, 1), jnp.float32),
        # EqualLinear(style_dim, C).weight : randn(C, S)
        "mod_w": jax.random.normal(k_modw, (in_channel, style_dim), jnp.float32),
        # EqualLinear bias (bias_init=1)
        "mod_b": jnp.ones((in_channel,), jnp.float32),
        # ToRGB.bias (zeros at init; nonzero here to exercise the SMEM path)
        "bias": 0.1 * jax.random.normal(k_bias, (1, 3, 1, 1), jnp.float32),
    }


if __name__ == "__main__":
    B, C, S, H, W = 2, 64, 32, 16, 16

    key = jax.random.PRNGKey(0)
    k_x, k_style, k_par, k_skip, k_x2, k_s2, k_par2 = jax.random.split(key, 7)

    x = jax.random.normal(k_x, (B, C, H, W), jnp.float32)
    style = jax.random.normal(k_style, (B, S), jnp.float32)
    skip = jax.random.normal(k_skip, (B, 3, H // 2, W // 2), jnp.float32)
    params = make_params(k_par, C, S)

    # 1) Blur-upsample glue cross-checked against brute-force numpy upfirdn2d.
    up_jax = upsample_2x(skip)
    jax.block_until_ready(up_jax)
    np.testing.assert_allclose(np.asarray(up_jax), _upsample_ref_np(np.asarray(skip)),
                               rtol=1e-5, atol=1e-5)

    # 2) No-skip path.
    out = to_rgb_forward(x, style, params, skip=None)
    jax.block_until_ready(out)
    ref = to_rgb_reference(x, style, params, skip=None)
    np.testing.assert_allclose(np.asarray(out), np.asarray(ref),
                               rtol=1e-5, atol=1e-5)

    # 3) Skip path (2x blur upsample, add fused into the kernel).
    out_skip = to_rgb_forward(x, style, params, skip=skip)
    jax.block_until_ready(out_skip)
    ref_skip = to_rgb_reference(x, style, params, skip=skip)
    np.testing.assert_allclose(np.asarray(out_skip), np.asarray(ref_skip),
                               rtol=1e-5, atol=1e-5)

    # 4) Non-divisible HW + forced >=2-program split (masked tail block path).
    B2, C2, H2 = 1, 32, 24
    x_nd = jax.random.normal(k_x2, (B2, C2, H2, H2), jnp.float32)
    style_nd = jax.random.normal(k_s2, (B2, S), jnp.float32)
    params_nd = make_params(k_par2, C2, S)
    out_nd = to_rgb_forward(x_nd, style_nd, params_nd, skip=None)
    jax.block_until_ready(out_nd)
    ref_nd = to_rgb_reference(x_nd, style_nd, params_nd, skip=None)
    np.testing.assert_allclose(np.asarray(out_nd), np.asarray(ref_nd),
                               rtol=1e-5, atol=1e-5)

    # 5) bf16 end-to-end data path (half the HBM bytes; f32 MXU accumulate).
    out_bf = to_rgb_forward(x.astype(jnp.bfloat16), style, params, skip=None)
    jax.block_until_ready(out_bf)
    out_bf_f32 = np.asarray(out_bf).astype(np.float32)
    assert np.isfinite(out_bf_f32).all()
    np.testing.assert_allclose(out_bf_f32, np.asarray(ref), rtol=0.1, atol=0.2)

    assert out.shape == (B, 3, H, W) and out_skip.shape == (B, 3, H, W)
    print("KERNEL_OK")
</pallas_src>

<mosaic_0001>
module attributes {stable_mosaic.version = 11 : i64} {
  func.func @_torgb_kernel(%arg0: i32, %arg1: i32, %arg2: memref<3xf32, #tpu.memory_space<smem>>, %arg3: memref<1x3x64xf32, #tpu.memory_space<vmem>>, %arg4: memref<1x64x256xf32, #tpu.memory_space<vmem>>, %arg5: memref<1x3x256xf32, #tpu.memory_space<vmem>>) attributes {dimension_semantics = [#tpu.dimension_semantics<parallel>, #tpu.dimension_semantics<parallel>], iteration_bounds = array<i64: 2, 1>, scalar_prefetch = 0 : i64, scratch_operands = 0 : i64, tpu.core_type = #tpu.core_type<tc>, window_params = [{transform_indices = @transform_0, window_bounds = array<i64: 3>}, {transform_indices = @transform_1, window_bounds = array<i64: 1, 3, 64>}, {transform_indices = @transform_2, window_bounds = array<i64: 1, 64, 256>}, {transform_indices = @transform_3, window_bounds = array<i64: 1, 3, 256>}]} {
    %c0 = arith.constant 0 : index
    %c0_0 = arith.constant 0 : index
    %c0_1 = arith.constant 0 : index
    %0 = vector.load %arg3[%c0, %c0_0, %c0_1] : memref<1x3x64xf32, #tpu.memory_space<vmem>>, vector<1x3x64xf32>
    %c0_2 = arith.constant 0 : index
    %c0_3 = arith.constant 0 : index
    %c0_4 = arith.constant 0 : index
    %1 = vector.load %arg4[%c0_2, %c0_3, %c0_4] : memref<1x64x256xf32, #tpu.memory_space<vmem>>, vector<1x64x256xf32>
    "tpu.trace_start"() <{level = 10 : i32, message = "boc,bcs->bos"}> : () -> ()
    %cst = arith.constant dense<0.000000e+00> : vector<1x3x256xf32>
    %2 = tpu.matmul %0, %1, %cst {dimension_numbers = #tpu.dot_dimension_numbers<[2], [1], [1], [2], [0, 0, 0, 1, 1, 2], [0], [0]>} : vector<1x3x64xf32>, vector<1x64x256xf32>, vector<1x3x256xf32> -> vector<1x3x256xf32>
    "tpu.trace_stop"() : () -> ()
    %3 = tpu.iota {dimensions = array<i32: 0>} : vector<3x1xi32>
    %c0_i32 = arith.constant 0 : i32
    %4 = vector.broadcast %c0_i32 : i32 to vector<3x1xi32>
    %5 = arith.cmpi eq, %3, %4 : vector<3x1xi32>
    %c0_5 = arith.constant 0 : index
    %6 = memref.load %arg2[%c0_5] : memref<3xf32, #tpu.memory_space<smem>>
    %c1_i32 = arith.constant 1 : i32
    %7 = vector.broadcast %c1_i32 : i32 to vector<3x1xi32>
    %8 = arith.cmpi eq, %3, %7 : vector<3x1xi32>
    %c1 = arith.constant 1 : index
    %9 = memref.load %arg2[%c1] : memref<3xf32, #tpu.memory_space<smem>>
    %c2 = arith.constant 2 : index
    %10 = memref.load %arg2[%c2] : memref<3xf32, #tpu.memory_space<smem>>
    %11 = vector.broadcast %9 : f32 to vector<3x1xf32>
    %12 = vector.broadcast %10 : f32 to vector<3x1xf32>
    %13 = arith.select %8, %11, %12 : vector<3x1xi1>, vector<3x1xf32>
    %14 = vector.broadcast %6 : f32 to vector<3x1xf32>
    %15 = arith.select %5, %14, %13 : vector<3x1xi1>, vector<3x1xf32>
    %16 = vector.shape_cast %15 : vector<3x1xf32> to vector<1x3x1xf32>
    %17 = vector.broadcast %16 : vector<1x3x1xf32> to vector<1x3x256xf32>
    %18 = arith.addf %2, %17 : vector<1x3x256xf32>
    %c0_6 = arith.constant 0 : index
    %c0_7 = arith.constant 0 : index
    %c0_8 = arith.constant 0 : index
    %19 = vector.load %arg5[%c0_6, %c0_7, %c0_8] : memref<1x3x256xf32, #tpu.memory_space<vmem>>, vector<1x3x256xf32>
    tpu.vector_store %arg5[%c0_6, %c0_7, %c0_8], %18 {strides = array<i32>} : memref<1x3x256xf32, #tpu.memory_space<vmem>>, vector<1x3x256xf32>,
    return
  }
  func.func @transform_0(%arg0: i32, %arg1: i32) -> i32 {
    %c0_i32 = arith.constant 0 : i32
    %c0_i32_0 = arith.constant 0 : i32
    return %c0_i32 : i32
  }
  func.func @transform_1(%arg0: i32, %arg1: i32) -> (i32, i32, i32) {
    %c0_i32 = arith.constant 0 : i32
    %c0_i32_0 = arith.constant 0 : i32
    %c0_i32_1 = arith.constant 0 : i32
    return %arg0, %c0_i32, %c0_i32_0 : i32, i32, i32
  }
  func.func @transform_2(%arg0: i32, %arg1: i32) -> (i32, i32, i32) {
    %c0_i32 = arith.constant 0 : i32
    %c0_i32_0 = arith.constant 0 : i32
    return %arg0, %c0_i32, %arg1 : i32, i32, i32
  }
  func.func @transform_3(%arg0: i32, %arg1: i32) -> (i32, i32, i32) {
    %c0_i32 = arith.constant 0 : i32
    %c0_i32_0 = arith.constant 0 : i32
    return %arg0, %c0_i32, %arg1 : i32, i32, i32
  }
}

</mosaic_0001>

<bundles_post_ra>
// kernel: tpu_custom_call.1
= control target key start
LH: loop header
LB: loop body
LE: loop exit
PB: predicated region body
PF: predicated region fallthrough
CT: control target
= control target key end

     0   :  { %8 = vsyncpa [#allocation4], 0  ;;  %s884_s0 = inlined_call_operand.vmem [shape: f32[3], index: 0, kind: input, shape index: {}]   ;;  %s885_s1 = inlined_call_operand.vmem [shape: f32[2,3,64], index: 1, kind: input, shape index: {}]   ;;  %s886_s2 = inlined_call_operand.hbm [shape: f32[2,64,256], index: 2, kind: input, shape index: {}]   ;;  %s887_s3 = inlined_call_operand.vmem [shape: f32[2,3,256], index: 3, kind: output, shape index: {}]  }
   0x1   :  { %9 = vsyncpa [#allocation3], 0 }
   0x2   :  { %11 = vsyncpa [#allocation3 + $0x1], 0  ;;  %s710_s12 = smov 0   ;;  %s712_s13 = smov 0  }
   0x3   :  { %s714_s14 = smov 0   ;;  %s716_s15 = smov 0  }
   0x4   :  { %s718_s16 = smov 0   ;;  %s720_s17 = smov 0  }
   0x5 LB: > { %s478_s18 = sadd.s32 4294967295, %s683_s17   ;;  %s85_s19 = sadd.s32 1, %s671_s14  ;;  %s683_s17 = sphi %s720_s17, %s17_s17   ;;  %s679_s16 = sphi %s718_s16, %s904_s16   ;;  %s675_s15 = sphi %s716_s15, %s903_s15   ;;  %s671_s14 = sphi %s714_s14, %s902_s14   ;;  %s667_s13 = sphi %s712_s13, %s901_s13   ;;  %s663_s12 = sphi %s710_s12, %s900_s12  }
   0x6   : > { %p92_p0 = scmp.ne.s32.totalorder %s671_s14, %s667_s13  ;;  %p93_p1 = scmp.eq.s32.totalorder %s683_s17, 0 }
   0x7   : > { %p98_p2 = scmp.ne.s32.totalorder %s667_s13, %s663_s12  ;;  %p744_p3 = scmp.eq.s32.totalorder %s478_s18, 0 }
   0x8   : > { %p94_p4 = por %p93_p1, %p92_p0  ;;  %p480_p5 = scmp.ge.s32.totalorder %s683_s17, 1 }
   0x9   : > { %s892_s20 = scalar_select %p744_p3, 1, 0 }
   0xa   : > { %p751_p6 = por %p744_p3, %p98_p2  ;;  %p137_p7 = scmp.lt.s32.totalorder %s683_s17, 3 }
   0xb   : > { %s150_s24 = sshll.u32 %s884_s0, 4  ;;  %p530_p10 = scmp.lt.s32.totalorder %s683_s17, 2  ;;  %s151_s24 = int_to_ptr.vmem [resolvable:$true] %s150_s24 }
   0xc   : > { %s893_s21 = scalar_select %p751_p6, 1, 0 }
   0xd   : > { %p759_p8 = pnand %p480_p5, %p137_p7  ;;  %s168_s26 = sand.u32 1, %s671_s14  }
   0xe   : > { %p769_p12 = pnand %p530_p10, %p94_p4  ;;  %s584_s28 = scalar_lea.vmem %s151_s24, 16 }
   0xf   : > { %s894_s25 = scalar_select %p759_p8, 1, 0 }
  0x10   : > { %p521_p9 = pneg %p759_p8  ;;  %p585_p13 = scmp.ne.s32.totalorder %s151_s24, %s584_s28 }
  0x11   : > { %p592_p5 = scmp.lt.s32.totalorder %s151_s24, %s151_s24  ;;  %p593_p7 = scmp.lt.s32.totalorder %s584_s28, %s584_s28 }
  0x12   : > { %p522_p11 = pnand %p521_p9, %p744_p3 }
  0x13   : > { %p594_p6 = por %p593_p7, %p592_p5 }
  0x14   : > { %p586_p0 = pneg %p522_p11 }
  0x16   : > { %p587_p1 = pnand %p586_p0, %p585_p13 }
  0x18   : > { %p588_p2 = pneg %p587_p1 }
  0x1a   : > { %p595_p8 = pnand %p594_p6, %p588_p2 }
  0x1c   : > { %598 = shalt.err (!%p595_p8)
}
  0x1d   : > { %s685_s29 = smov [#allocation2]   ;;  %s29_s30 = sadd.s32 1, %s679_s16 }
  0x1e   : > { %524 = dma.vmem_to_smem (!%p522_p11), %s151_s24, 16, %s685_s29, [#allocation4]  }
  0x1f   : > { %s483_s4 = sshll.u32 %s168_s26, 7  ;;  %p31_p4 = scmp.ge.s32.totalorder %s29_s30, 2 }
  0x20   : > { %s497_s5 = sshll.u32 %s679_s16, 11  ;;  %s172_s6 = scalar_lea.vmem [#allocation5], %s483_s4 }
  0x21   : > { %s181_s7 = sshll.u32 %s172_s6, 4  ;;  %s906_s30 = smov (%p31_p4, %s29_s30), 0  ;;  %s782_s7 = int_to_ptr.vmem [resolvable:$true] %s181_s7 }
  0x22   : > { %s780_s10 = scalar_lea.hbm %s886_s2, %s497_s5  ;;  %s80_s11 = ssub.s32 %s679_s16, %s906_s30 }
  0x23   : > { %p786_p6 = scmp.eq.s32.totalorder %s80_s11, 0  ;;  %s790_s18 = scalar_lea.sflag [#allocation3], %s168_s26 }
  0x24   : > { %s599_s22 = scalar_lea.hbm %s780_s10, 2048  ;;  %p601_p9 = pneg %p769_p12 }
  0x25   : > { %p600_p8 = scmp.ne.s32.totalorder %s780_s10, %s599_s22  ;;  %s604_s28 = scalar_lea.hbm %s886_s2, 4096 }
  0x26   : > { %p605_p13 = scmp.lt.u32.totalorder %s780_s10, %s886_s2  ;;  %p606_p0 = scmp.lt.u32.totalorder %s604_s28, %s599_s22 }
  0x27   : > { %p602_p10 = pnand %p601_p9, %p600_p8  ;;  %p608_p2 = scmp.lt.u32.totalorder %s599_s22, %s780_s10 }
  0x28   : > { %p607_p1 = por %p606_p0, %p605_p13 }
  0x29   : > { %p603_p11 = pneg %p602_p10 }
  0x2a   : > { %p609_p5 = por %p608_p2, %p607_p1 }
  0x2c   : > { %p610_p7 = pnand %p609_p5, %p603_p11 }
  0x2e   : > { %613 = shalt.err (!%p610_p7)
}
  0x2f   : > { %s614_s26 = scalar_lea.vmem %s782_s7, 2048  ;;  %s686_s5 = smov [#allocation5]  }
  0x30   : > { %p615_p4 = scmp.ne.s32.totalorder %s782_s7, %s614_s26  ;;  %s619_s6 = sshll.u32 %s686_s5, 4  ;;  %s620_s6 = int_to_ptr.vmem [resolvable:$false] %s619_s6 }
  0x31   : > { %s621_s8 = scalar_lea.vmem %s620_s6, 4096  ;;  %p622_p3 = scmp.lt.s32.totalorder %s782_s7, %s620_s6 }
  0x32   : > { %p617_p8 = pnand %p615_p4, %p601_p9  ;;  %p623_p13 = scmp.lt.s32.totalorder %s621_s8, %s614_s26 }
  0x34   : > { %p618_p10 = pneg %p617_p8  ;;  %p624_p0 = por %p623_p13, %p622_p3 }
  0x36   : > { %p625_p1 = pnand %p624_p0, %p618_p10 }
  0x38   : > { %628 = shalt.err (!%p625_p1)
}
  0x39   : > { %s687_s9 = smov 256   ;;  %s688_s11 = smov 16  }
  0x3a   : > { %528 = dma.hbm_to_vmem [thread:$0]  (!%p769_p12), %s780_s10, 2048, %s782_s7, %s790_s18, %s687_s9, %s687_s9, %s688_s11  }
  0x3b   : > { %s823_s22 = scalar_select %p786_p6, %s671_s14, %s85_s19  }
  0x3c   : > { %p897_p9 = scmp.ne.s32.totalorder %s894_s25, 0 }
  0x3d   : > { %p898_p3 = scmp.ne.s32.totalorder (!%p897_p9), %s892_s20, 0 }
  0x3e   : > { %193 = sbr.rel (%p897_p9) target bundleno = 313 (0x139), region = 32 }
  0x45   : > { %654 = dma.done.wait (%p898_p3), [#allocation4], 16  }
  0x46   : > { %656 = vsyncadd (%p898_p3), [#allocation4], 4294967280  ;;  %s199_s23 = sand.u32 1, %s667_s13   ;;  %p899_p12 = scmp.ne.s32.totalorder %s893_s21, 0 }
  0x47   : > { %s488_s24 = sshll.u32 %s199_s23, 7  ;;  %s200_s28 = scalar_lea.sflag [#allocation3], %s199_s23 }
  0x48   : > { %s832_s27 = scalar_lea.vmem [#allocation5], %s488_s24 }
  0x49   : > { %658 = dma.done.wait (%p899_p12), %s200_s28, 2048  }
  0x4a   : > { %660 = vsyncadd (%p899_p12), %s200_s28, 4294965248 }
  0x4b   : > { %208 = sfence }
  0x4c   : > { %v252_v0 = vld [vmem:[%s832_s27 + $0x8] sm:$0xff]  ;;  %v254_v1 = vld [vmem:[%s832_s27 + $0x18] sm:$0xff]  ;;  %v251_v2 = vld [vmem:[%s832_s27] sm:$0xff]  ;;  %v689_v7 = vmov 0.0   ;;  %p235_p6 = scmp.lt.s32.totalorder %s675_s15, 1  ;;  %vm279_vm0 = vcmask 523264   ;;  %v267_v26 = vlaneseq }
  0x4d   : > { %v499_v3 = vpack.c.bf16 %v254_v1, %v252_v0  ;;  %v253_v4 = vld [vmem:[%s832_s27 + $0x10] sm:$0xff]  ;;  %v256_v5 = vld [vmem:[%s832_s27 + $0x28] sm:$0xff]  ;;  %v258_v6 = vld [vmem:[%s832_s27 + $0x38] sm:$0xff]  ;;  %347 = vmatprep.mubr.f32.mxu0 %v689_v7  ;;  %s492_s7 = sld [smem:[#allocation2 + $0x1]]  ;;  %s493_s10 = sld [smem:[#allocation2 + $0x2]] }
  0x4e   : > { %v501_v8 = vpack.c.bf16 %v253_v4, %v251_v2  ;;  %v503_v9 = vpack.c.bf16 %v258_v6, %v256_v5  ;;  %v255_v10 = vld [vmem:[%s832_s27 + $0x20] sm:$0xff]  ;;  %v257_v11 = vld [vmem:[%s832_s27 + $0x30] sm:$0xff]  ;;  %v260_v12 = vld [vmem:[%s832_s27 + $0x48] sm:$0xff]  ;;  %s908_s15 = smov (!%p235_p6, %s675_s15), 1  ;;  %s270_s12 = sld [smem:[#allocation2]]  ;;  %v268_v27 = vshrl.u32 %v267_v26, 7 }
  0x4f   : > { %500 = vmatprep.subr.bf16.mxu0 %v499_v3  ;;  %v262_v13 = vld [vmem:[%s832_s27 + $0x58] sm:$0xff]  ;;  %v505_v14 = vpack.c.bf16 %v257_v11, %v255_v10  ;;  %v259_v16 = vld [vmem:[%s832_s27 + $0x40] sm:$0xff]  ;;  %v261_v17 = vld [vmem:[%s832_s27 + $0x50] sm:$0xff]  ;;  %s489_s19 = sshll.u32 %s908_s15, 2  ;;  %s498_s18 = sshll.u32 %s908_s15, 3 }
  0x50   : > { %502 = vmatpush1.bf16.msra.mxu0 %v501_v8  ;;  %v507_v15 = vpack.c.bf16 %v262_v13, %v260_v12  ;;  %v264_v18 = vld [vmem:[%s832_s27 + $0x68] sm:$0xff]  ;;  %v266_v19 = vld [vmem:[%s832_s27 + $0x78] sm:$0xff]  ;;  %v509_v20 = vpack.c.bf16 %v261_v17, %v259_v16  ;;  %v263_v22 = vld [vmem:[%s832_s27 + $0x60] sm:$0xff]  ;;  %s238_s25 = scalar_lea.vmem %s885_s1, %s489_s19  ;;  %vm271_vm1 = vcmp.eq.s32.totalorder %v268_v27, 1  ;;  %vm269_vm2 = vcmp.eq.s32.totalorder %v268_v27, 0  ;;  %s248_s26 = scalar_lea.vmem %s887_s3, %s498_s18 }
  0x51   : > { %504 = vmatprep.subr.bf16.mxu0 %v503_v9  ;;  %v511_v21 = vpack.c.bf16 %v266_v19, %v264_v18  ;;  %v265_v23 = vld [vmem:[%s832_s27 + $0x70] sm:$0xff]  ;;  %v250_v25 = vld [vmem:[%s238_s25] sm:$0x7] }
  0x52   : > { %v513_v24 = vpack.c.bf16 %v265_v23, %v263_v22 }
  0x53   : > { %v274_v28 = vstv %s492_s7  ;;  %v275_v29 = vstv %s493_s10 }
  0x54   : > { %506 = vmatpush1.bf16.msra.mxu0 %v505_v14  ;;  %v276_v30 = vsel %vm271_vm1, %v274_v28, %v275_v29  ;;  %v277_v31 = vstv %s270_s12 }
  0x55   : > { %508 = vmatprep.subr.bf16.mxu0 %v507_v15  ;;  %v278_v32 = vsel %vm269_vm2, %v277_v31, %v276_v30 }
  0x58   : > { %510 = vmatpush1.bf16.msra.mxu0 %v509_v20 }
  0x59   : > { %512 = vmatprep.subr.bf16.mxu0 %v511_v21 }
  0x5c   : > { %514 = vmatpush1.bf16.msra.mxu0 %v513_v24 }
  0x5f   : > { %494 = vmatmul.mubr.msk.f32.vlgmr.msra.gmra.mrb[0].mxu0 %vm279_vm0, %v250_v25 }
 0x132   : > { %v349_v33 = vpop.f32.mrb[0].mxu0 }
 0x133   : > { %v350_v34 = vadd.f32 %v349_v33, %v278_v32  ;;  %v351_v35 = vpop.f32.mrb[1].mxu0 }
 0x134   : > { %v352_v36 = vadd.f32 %v351_v35, %v278_v32 }
 0x136   : > { %v356_v37 = vcombine.low %v350_v34, %v352_v36 }
 0x138   : > { %358 = vst [vmem:[%s248_s26] sm:$0x77] %v356_v37 }
 0x139 PF: > { %s17_s17 = sadd.s32 1, %s683_s17   ;;  %s900_s12 = smov %s667_s13 }
 0x13a   : > { %p14_p11 = scmp.ge.s32.totalorder %s17_s17, 4   ;;  %s901_s13 = smov %s671_s14 }
 0x13b   : > { %s902_s14 = smov %s823_s22  ;;  %s903_s15 = smov %s679_s16 }
 0x13c   : > { %s904_s16 = smov %s906_s30  ;;  %16 = sbr.rel (!%p14_p11) target bundleno = 5 (0x5), region = 80 }
 0x143   :  { %389 = vsyncpa [#allocation3], 1 }
 0x144   :  { %391 = vsyncpa [#allocation3 + $0x1], 1 }
 0x145   :  { %392 = vsyncpa [#allocation4], 1 }
 0x146   :  { %394 = vsyncpa [#allocation4 + $0x1], 1 }

</bundles_post_ra>
